<compile_context>
chip_gen: v7x
topology: tpu7x:2x2x1
jax: 0.10.0
libtpu: 0.0.40
codegen_flags: <defaults>
</compile_context>

<pallas_src>
import numpy as np
import jax
import jax.numpy as jnp
from jax.experimental import pallas as pl
from jax.experimental.pallas import tpu as pltpu


def _sobel_kernels(size=5):
    """Deterministic 5x5 'sobel-like' kernels, matching the PyTorch get_sobel_kernel."""
    assert size % 2 == 1
    r = np.arange(-(size // 2), size // 2 + 1, dtype=np.float32)          # [-2,-1,0,1,2]
    h = np.broadcast_to(r[:, None], (size, size)).astype(np.float32)      # meshgrid 'ij'
    v = np.broadcast_to(r[None, :], (size, size)).astype(np.float32)
    denom = h * h + v * v + np.float32(1e-15)
    return (h / denom).astype(np.float32), (v / denom).astype(np.float32)


def _banded_col_mat(taps, W):
    """(W, W) banded matrix M with M[x_src, x_out] = taps[x_src - x_out + 2].

    (row_slice @ M)[y, x] == sum_c taps[c] * row_slice[y, x + c - 2], with zero contribution
    outside [0, W) -- i.e. the 5 column taps of one kernel row, including the conv2d
    padding=2 zero boundary, as a single MXU matmul.
    """
    M = np.zeros((W, W), np.float32)
    for c in range(5):
        off = c - 2
        for x in range(max(0, -off), min(W, W - off)):
            M[x + off, x] = taps[c]
    return M


def _col_mats(W):
    """The 5 banded column-tap matrices left after row-symmetry folding.

    K_h: row4 = -row0, row3 = -row1, row2 = 0.  K_v: row4 = row0, row3 = row1.  Hence
        g_h = (p0 - p4) @ C[0] + (p1 - p3) @ C[1]
        g_v = (p0 + p4) @ C[2] + (p1 + p3) @ C[3] + p2 @ C[4]
    where p_a is the a-th row-shifted slice of the 2-row zero-haloed difference plane.
    """
    KH, KV = _sobel_kernels(5)
    return np.stack([
        _banded_col_mat(KH[0], W),
        _banded_col_mat(KH[1], W),
        _banded_col_mat(KV[0], W),
        _banded_col_mat(KV[1], W),
        _banded_col_mat(KV[2], W),
    ])


def _round_up(x, m):
    return (x + m - 1) // m * m


def _choose_b_tile(N, H, W):
    """Batch elements per grid step, budgeted against the tightest (v7x 64 MiB) VMEM."""
    if H % 8 != 0:
        return 1   # keeps the in-kernel (B,H,W)->(B*H,W) reshape a pure re-labeling
    plane = _round_up(H, 8) * _round_up(W, 128) * 4
    cmat = 2 * 5 * _round_up(W, 8) * _round_up(W, 128) * 4       # double-buffered constants
    per_elem = 24 * plane    # dbl-buffered inputs + 2 haloed scratch planes + conv temporaries
    budget = (20 << 20) - cmat
    b = max(1, min(64, budget // max(per_elem, 1)))
    if N >= 2:
        b = min(b, max(1, N // 2))   # keep G >= 2 so both v7x TensorCores get grid steps
    return int(max(1, min(b, N)))


def _make_msge_kernel(B, H, W):
    HIGH = jax.lax.Precision.HIGHEST

    def kernel(c_ref, yhat_ref, tgt_ref, m_ref, num_ref, den_ref, padh_ref, padv_ref):
        f32 = jnp.float32

        # Zero only the 2-row halo strips; interior rows are fully overwritten below.
        # (Grid axis is 'parallel' -> no reliable "first step", so re-zero every step: cheap.)
        zrow = jnp.zeros((B, 2, W), f32)
        padh_ref[:, 0:2, :] = zrow
        padh_ref[:, H + 2:H + 4, :] = zrow
        padv_ref[:, 0:2, :] = zrow
        padv_ref[:, H + 2:H + 4, :] = zrow

        # conv(target) - conv(yhat) == conv(target - yhat): subtract once, right after DMA.
        d = tgt_ref[...].astype(f32) - yhat_ref[...].astype(f32)     # (B, 2, H, W)
        padh_ref[:, 2:2 + H, :] = d[:, 0]                            # horizontal-map diff
        padv_ref[:, 2:2 + H, :] = d[:, 1]                            # vertical-map diff

        def rows(ref, a):            # a-th row-shifted slice, batch folded into the row axis
            return ref[:, a:a + H, :].reshape(B * H, W)

        # Row-symmetry folding -> 4 adds/subs + 5 MXU matmuls per step.
        h0 = rows(padh_ref, 0) - rows(padh_ref, 4)
        h1 = rows(padh_ref, 1) - rows(padh_ref, 3)
        v0 = rows(padv_ref, 0) + rows(padv_ref, 4)
        v1 = rows(padv_ref, 1) + rows(padv_ref, 3)
        v2 = rows(padv_ref, 2)

        def mm(x, k):
            return jnp.dot(x, c_ref[k], preferred_element_type=f32, precision=HIGH)

        gh = mm(h0, 0) + mm(h1, 1)
        gv = mm(v0, 2) + mm(v1, 3) + mm(v2, 4)

        m = m_ref[...].astype(f32).reshape(B * H, W)
        num_ref[...] = jnp.zeros((1, 1, 1), f32) + jnp.sum(m * (gh * gh + gv * gv))
        den_ref[...] = jnp.zeros((1, 1, 1), f32) + jnp.sum(m)

    return kernel


def msge_loss_pallas(yhat, target, mask):
    N, C, H, W = yhat.shape
    assert C == 2, "expects combined horizontal/vertical maps (2 channels)"
    assert target.shape == (N, C, H, W) and mask.shape == (N, H, W)

    cmat = jnp.asarray(_col_mats(W))                                  # (5, W, W) f32 constants

    B_TILE = _choose_b_tile(N, H, W)
    G = (N + B_TILE - 1) // B_TILE
    N_pad = G * B_TILE
    if N_pad != N:
        # zero-padded batch elements contribute exactly 0 to both partial sums
        yhat = jnp.pad(yhat, ((0, N_pad - N),) + ((0, 0),) * 3)
        target = jnp.pad(target, ((0, N_pad - N),) + ((0, 0),) * 3)
        mask = jnp.pad(mask, ((0, N_pad - N),) + ((0, 0),) * 2)

    Hp = H + 4                                                        # 2-row halo, no col pad

    num_parts, den_parts = pl.pallas_call(
        _make_msge_kernel(B_TILE, H, W),
        out_shape=(jax.ShapeDtypeStruct((G, 1, 1), jnp.float32),
                   jax.ShapeDtypeStruct((G, 1, 1), jnp.float32)),
        grid_spec=pltpu.PrefetchScalarGridSpec(
            num_scalar_prefetch=0,
            grid=(G,),
            in_specs=[
                pl.BlockSpec((5, W, W), lambda g: (0, 0, 0)),         # constant block: no re-DMA
                pl.BlockSpec((B_TILE, 2, H, W), lambda g: (g, 0, 0, 0)),
                pl.BlockSpec((B_TILE, 2, H, W), lambda g: (g, 0, 0, 0)),
                pl.BlockSpec((B_TILE, H, W), lambda g: (g, 0, 0)),
            ],
            out_specs=[
                pl.BlockSpec((1, 1, 1), lambda g: (g, 0, 0)),
                pl.BlockSpec((1, 1, 1), lambda g: (g, 0, 0)),
            ],
            scratch_shapes=[
                pltpu.VMEM((B_TILE, Hp, W), jnp.float32),
                pltpu.VMEM((B_TILE, Hp, W), jnp.float32),
            ],
        ),
        compiler_params=pltpu.CompilerParams(
            # each step writes its own partials -> no carried state -> safe to shard across
            # TensorCores (2 TCs on v7x); no-op on v5e/v6e.
            dimension_semantics=("parallel",),
            vmem_limit_bytes=48 * 1024 * 1024,
        ),
    )(cmat, yhat, target, mask)

    num = jnp.sum(num_parts)
    den = 2.0 * jnp.sum(den_parts)     # focus == mask duplicated over both gradient channels
    return num / (den + 1e-8)


def _msge_loss_ref(yhat, target, mask):
    """Pure-JAX reference (XLA conv) for correctness checking."""
    KH, KV = _sobel_kernels(5)
    kh = jnp.asarray(KH).reshape(1, 1, 5, 5)
    kv = jnp.asarray(KV).reshape(1, 1, 5, 5)

    def grad_hv(hv):
        h_ch = hv[:, 0:1].astype(jnp.float32)
        v_ch = hv[:, 1:2].astype(jnp.float32)
        dh = jax.lax.conv_general_dilated(h_ch, kh, (1, 1), [(2, 2), (2, 2)],
                                          precision=jax.lax.Precision.HIGHEST)
        dv = jax.lax.conv_general_dilated(v_ch, kv, (1, 1), [(2, 2), (2, 2)],
                                          precision=jax.lax.Precision.HIGHEST)
        return jnp.concatenate([dh, dv], axis=1)

    diff = grad_hv(target) - grad_hv(yhat)
    m = mask.astype(jnp.float32)[:, None]   # broadcast over the 2 gradient channels
    num = jnp.sum(m * diff * diff)
    den = 2.0 * jnp.sum(m) + 1e-8
    return num / den


if __name__ == "__main__":
    key = jax.random.PRNGKey(0)
    k1, k2, k3 = jax.random.split(key, 3)

    N, C, H, W = 2, 2, 16, 16
    yhat = jax.random.normal(k1, (N, C, H, W), dtype=jnp.float32)
    target = jax.random.normal(k2, (N, C, H, W), dtype=jnp.float32)
    mask = (jax.random.uniform(k3, (N, H, W)) > 0.5).astype(jnp.float32)

    loss = jax.block_until_ready(msge_loss_pallas(yhat, target, mask))

    ref = jax.block_until_ready(_msge_loss_ref(yhat, target, mask))
    np.testing.assert_allclose(np.asarray(loss), np.asarray(ref), rtol=1e-5, atol=1e-5)

    print("KERNEL_OK")
</pallas_src>

<mosaic_0001>
module attributes {stable_mosaic.version = 11 : i64} {
  func.func @kernel(%arg0: i32, %arg1: memref<5x16x16xf32, #tpu.memory_space<vmem>>, %arg2: memref<1x2x16x16xf32, #tpu.memory_space<vmem>>, %arg3: memref<1x2x16x16xf32, #tpu.memory_space<vmem>>, %arg4: memref<1x16x16xf32, #tpu.memory_space<vmem>>, %arg5: memref<1x1x1xf32, #tpu.memory_space<vmem>>, %arg6: memref<1x1x1xf32, #tpu.memory_space<vmem>>, %arg7: memref<1x20x16xf32, #tpu.memory_space<vmem>>, %arg8: memref<1x20x16xf32, #tpu.memory_space<vmem>>) attributes {dimension_semantics = [#tpu.dimension_semantics<parallel>], iteration_bounds = array<i64: 2>, scalar_prefetch = 0 : i64, scratch_operands = 2 : i64, tpu.core_type = #tpu.core_type<tc>, window_params = [{pipeline_mode = #tpu.pipeline_mode<synchronous>, transform_indices = @transform_0, window_bounds = array<i64: 5, 16, 16>}, {transform_indices = @transform_1, window_bounds = array<i64: 1, 2, 16, 16>}, {transform_indices = @transform_2, window_bounds = array<i64: 1, 2, 16, 16>}, {transform_indices = @transform_3, window_bounds = array<i64: 1, 16, 16>}, {transform_indices = @transform_4, window_bounds = array<i64: 1, 1, 1>}, {transform_indices = @transform_5, window_bounds = array<i64: 1, 1, 1>}]} {
    %cst = arith.constant 0.000000e+00 : f32
    %0 = vector.broadcast %cst : f32 to vector<1x2x16xf32>
    %c0 = arith.constant 0 : index
    %c0_0 = arith.constant 0 : index
    %c0_1 = arith.constant 0 : index
    %1 = vector.load %arg7[%c0, %c0_0, %c0_1] : memref<1x20x16xf32, #tpu.memory_space<vmem>>, vector<1x2x16xf32>
    tpu.vector_store %arg7[%c0, %c0_0, %c0_1], %0 {strides = array<i32>} : memref<1x20x16xf32, #tpu.memory_space<vmem>>, vector<1x2x16xf32>,
    %c0_2 = arith.constant 0 : index
    %c18 = arith.constant 18 : index
    %c0_3 = arith.constant 0 : index
    %2 = vector.load %arg7[%c0_2, %c18, %c0_3] : memref<1x20x16xf32, #tpu.memory_space<vmem>>, vector<1x2x16xf32>
    tpu.vector_store %arg7[%c0_2, %c18, %c0_3], %0 {strides = array<i32>} : memref<1x20x16xf32, #tpu.memory_space<vmem>>, vector<1x2x16xf32>,
    %c0_4 = arith.constant 0 : index
    %c0_5 = arith.constant 0 : index
    %c0_6 = arith.constant 0 : index
    %3 = vector.load %arg8[%c0_4, %c0_5, %c0_6] : memref<1x20x16xf32, #tpu.memory_space<vmem>>, vector<1x2x16xf32>
    tpu.vector_store %arg8[%c0_4, %c0_5, %c0_6], %0 {strides = array<i32>} : memref<1x20x16xf32, #tpu.memory_space<vmem>>, vector<1x2x16xf32>,
    %c0_7 = arith.constant 0 : index
    %c18_8 = arith.constant 18 : index
    %c0_9 = arith.constant 0 : index
    %4 = vector.load %arg8[%c0_7, %c18_8, %c0_9] : memref<1x20x16xf32, #tpu.memory_space<vmem>>, vector<1x2x16xf32>
    tpu.vector_store %arg8[%c0_7, %c18_8, %c0_9], %0 {strides = array<i32>} : memref<1x20x16xf32, #tpu.memory_space<vmem>>, vector<1x2x16xf32>,
    %c0_10 = arith.constant 0 : index
    %c0_11 = arith.constant 0 : index
    %c0_12 = arith.constant 0 : index
    %c0_13 = arith.constant 0 : index
    %5 = vector.load %arg3[%c0_10, %c0_11, %c0_12, %c0_13] : memref<1x2x16x16xf32, #tpu.memory_space<vmem>>, vector<1x2x16x16xf32>
    %c0_14 = arith.constant 0 : index
    %c0_15 = arith.constant 0 : index
    %c0_16 = arith.constant 0 : index
    %c0_17 = arith.constant 0 : index
    %6 = vector.load %arg2[%c0_14, %c0_15, %c0_16, %c0_17] : memref<1x2x16x16xf32, #tpu.memory_space<vmem>>, vector<1x2x16x16xf32>
    %7 = arith.subf %5, %6 : vector<1x2x16x16xf32>
    %8 = vector.extract_strided_slice %7 {offsets = [0, 0, 0, 0], sizes = [1, 1, 16, 16], strides = [1, 1, 1, 1]} : vector<1x2x16x16xf32> to vector<1x1x16x16xf32>
    %9 = vector.shape_cast %8 : vector<1x1x16x16xf32> to vector<1x16x16xf32>
    %c0_18 = arith.constant 0 : index
    %c2 = arith.constant 2 : index
    %c0_19 = arith.constant 0 : index
    %10 = vector.load %arg7[%c0_18, %c2, %c0_19] : memref<1x20x16xf32, #tpu.memory_space<vmem>>, vector<1x16x16xf32>
    tpu.vector_store %arg7[%c0_18, %c2, %c0_19], %9 {strides = array<i32>} : memref<1x20x16xf32, #tpu.memory_space<vmem>>, vector<1x16x16xf32>,
    %11 = vector.extract_strided_slice %7 {offsets = [0, 1, 0, 0], sizes = [1, 1, 16, 16], strides = [1, 1, 1, 1]} : vector<1x2x16x16xf32> to vector<1x1x16x16xf32>
    %12 = vector.shape_cast %11 : vector<1x1x16x16xf32> to vector<1x16x16xf32>
    %c0_20 = arith.constant 0 : index
    %c2_21 = arith.constant 2 : index
    %c0_22 = arith.constant 0 : index
    %13 = vector.load %arg8[%c0_20, %c2_21, %c0_22] : memref<1x20x16xf32, #tpu.memory_space<vmem>>, vector<1x16x16xf32>
    tpu.vector_store %arg8[%c0_20, %c2_21, %c0_22], %12 {strides = array<i32>} : memref<1x20x16xf32, #tpu.memory_space<vmem>>, vector<1x16x16xf32>,
    %c0_23 = arith.constant 0 : index
    %c0_24 = arith.constant 0 : index
    %c0_25 = arith.constant 0 : index
    %14 = vector.load %arg7[%c0_23, %c0_24, %c0_25] : memref<1x20x16xf32, #tpu.memory_space<vmem>>, vector<1x16x16xf32>
    %15 = vector.shape_cast %14 : vector<1x16x16xf32> to vector<16x16xf32>
    %c0_26 = arith.constant 0 : index
    %c4 = arith.constant 4 : index
    %c0_27 = arith.constant 0 : index
    %16 = vector.load %arg7[%c0_26, %c4, %c0_27] : memref<1x20x16xf32, #tpu.memory_space<vmem>>, vector<1x16x16xf32>
    %17 = vector.shape_cast %16 : vector<1x16x16xf32> to vector<16x16xf32>
    %18 = arith.subf %15, %17 : vector<16x16xf32>
    %c0_28 = arith.constant 0 : index
    %c1 = arith.constant 1 : index
    %c0_29 = arith.constant 0 : index
    %19 = vector.load %arg7[%c0_28, %c1, %c0_29] : memref<1x20x16xf32, #tpu.memory_space<vmem>>, vector<1x16x16xf32>
    %20 = vector.shape_cast %19 : vector<1x16x16xf32> to vector<16x16xf32>
    %c0_30 = arith.constant 0 : index
    %c3 = arith.constant 3 : index
    %c0_31 = arith.constant 0 : index
    %21 = vector.load %arg7[%c0_30, %c3, %c0_31] : memref<1x20x16xf32, #tpu.memory_space<vmem>>, vector<1x16x16xf32>
    %22 = vector.shape_cast %21 : vector<1x16x16xf32> to vector<16x16xf32>
    %23 = arith.subf %20, %22 : vector<16x16xf32>
    %c0_32 = arith.constant 0 : index
    %c0_33 = arith.constant 0 : index
    %c0_34 = arith.constant 0 : index
    %24 = vector.load %arg8[%c0_32, %c0_33, %c0_34] : memref<1x20x16xf32, #tpu.memory_space<vmem>>, vector<1x16x16xf32>
    %25 = vector.shape_cast %24 : vector<1x16x16xf32> to vector<16x16xf32>
    %c0_35 = arith.constant 0 : index
    %c4_36 = arith.constant 4 : index
    %c0_37 = arith.constant 0 : index
    %26 = vector.load %arg8[%c0_35, %c4_36, %c0_37] : memref<1x20x16xf32, #tpu.memory_space<vmem>>, vector<1x16x16xf32>
    %27 = vector.shape_cast %26 : vector<1x16x16xf32> to vector<16x16xf32>
    %28 = arith.addf %25, %27 : vector<16x16xf32>
    %c0_38 = arith.constant 0 : index
    %c1_39 = arith.constant 1 : index
    %c0_40 = arith.constant 0 : index
    %29 = vector.load %arg8[%c0_38, %c1_39, %c0_40] : memref<1x20x16xf32, #tpu.memory_space<vmem>>, vector<1x16x16xf32>
    %30 = vector.shape_cast %29 : vector<1x16x16xf32> to vector<16x16xf32>
    %c0_41 = arith.constant 0 : index
    %c3_42 = arith.constant 3 : index
    %c0_43 = arith.constant 0 : index
    %31 = vector.load %arg8[%c0_41, %c3_42, %c0_43] : memref<1x20x16xf32, #tpu.memory_space<vmem>>, vector<1x16x16xf32>
    %32 = vector.shape_cast %31 : vector<1x16x16xf32> to vector<16x16xf32>
    %33 = arith.addf %30, %32 : vector<16x16xf32>
    %c0_44 = arith.constant 0 : index
    %c2_45 = arith.constant 2 : index
    %c0_46 = arith.constant 0 : index
    %34 = vector.load %arg8[%c0_44, %c2_45, %c0_46] : memref<1x20x16xf32, #tpu.memory_space<vmem>>, vector<1x16x16xf32>
    %35 = vector.shape_cast %34 : vector<1x16x16xf32> to vector<16x16xf32>
    %c0_47 = arith.constant 0 : index
    %c0_48 = arith.constant 0 : index
    %c0_49 = arith.constant 0 : index
    %36 = vector.load %arg1[%c0_47, %c0_48, %c0_49] : memref<5x16x16xf32, #tpu.memory_space<vmem>>, vector<1x16x16xf32>
    %37 = vector.shape_cast %36 : vector<1x16x16xf32> to vector<16x16xf32>
    %cst_50 = arith.constant dense<0.000000e+00> : vector<16x16xf32>
    %38 = tpu.matmul %18, %37, %cst_50 {dimension_numbers = #tpu.dot_dimension_numbers<[1], [0], [0], [1], [0, 0, 1, 1], [], []>, precision = #tpu.contract_precision<fp32>} : vector<16x16xf32>, vector<16x16xf32>, vector<16x16xf32> -> vector<16x16xf32>
    %c1_51 = arith.constant 1 : index
    %c0_52 = arith.constant 0 : index
    %c0_53 = arith.constant 0 : index
    %39 = vector.load %arg1[%c1_51, %c0_52, %c0_53] : memref<5x16x16xf32, #tpu.memory_space<vmem>>, vector<1x16x16xf32>
    %40 = vector.shape_cast %39 : vector<1x16x16xf32> to vector<16x16xf32>
    %cst_54 = arith.constant dense<0.000000e+00> : vector<16x16xf32>
    %41 = tpu.matmul %23, %40, %cst_54 {dimension_numbers = #tpu.dot_dimension_numbers<[1], [0], [0], [1], [0, 0, 1, 1], [], []>, precision = #tpu.contract_precision<fp32>} : vector<16x16xf32>, vector<16x16xf32>, vector<16x16xf32> -> vector<16x16xf32>
    %42 = arith.addf %38, %41 : vector<16x16xf32>
    %c2_55 = arith.constant 2 : index
    %c0_56 = arith.constant 0 : index
    %c0_57 = arith.constant 0 : index
    %43 = vector.load %arg1[%c2_55, %c0_56, %c0_57] : memref<5x16x16xf32, #tpu.memory_space<vmem>>, vector<1x16x16xf32>
    %44 = vector.shape_cast %43 : vector<1x16x16xf32> to vector<16x16xf32>
    %cst_58 = arith.constant dense<0.000000e+00> : vector<16x16xf32>
    %45 = tpu.matmul %28, %44, %cst_58 {dimension_numbers = #tpu.dot_dimension_numbers<[1], [0], [0], [1], [0, 0, 1, 1], [], []>, precision = #tpu.contract_precision<fp32>} : vector<16x16xf32>, vector<16x16xf32>, vector<16x16xf32> -> vector<16x16xf32>
    %c3_59 = arith.constant 3 : index
    %c0_60 = arith.constant 0 : index
    %c0_61 = arith.constant 0 : index
    %46 = vector.load %arg1[%c3_59, %c0_60, %c0_61] : memref<5x16x16xf32, #tpu.memory_space<vmem>>, vector<1x16x16xf32>
    %47 = vector.shape_cast %46 : vector<1x16x16xf32> to vector<16x16xf32>
    %cst_62 = arith.constant dense<0.000000e+00> : vector<16x16xf32>
    %48 = tpu.matmul %33, %47, %cst_62 {dimension_numbers = #tpu.dot_dimension_numbers<[1], [0], [0], [1], [0, 0, 1, 1], [], []>, precision = #tpu.contract_precision<fp32>} : vector<16x16xf32>, vector<16x16xf32>, vector<16x16xf32> -> vector<16x16xf32>
    %49 = arith.addf %45, %48 : vector<16x16xf32>
    %c4_63 = arith.constant 4 : index
    %c0_64 = arith.constant 0 : index
    %c0_65 = arith.constant 0 : index
    %50 = vector.load %arg1[%c4_63, %c0_64, %c0_65] : memref<5x16x16xf32, #tpu.memory_space<vmem>>, vector<1x16x16xf32>
    %51 = vector.shape_cast %50 : vector<1x16x16xf32> to vector<16x16xf32>
    %cst_66 = arith.constant dense<0.000000e+00> : vector<16x16xf32>
    %52 = tpu.matmul %35, %51, %cst_66 {dimension_numbers = #tpu.dot_dimension_numbers<[1], [0], [0], [1], [0, 0, 1, 1], [], []>, precision = #tpu.contract_precision<fp32>} : vector<16x16xf32>, vector<16x16xf32>, vector<16x16xf32> -> vector<16x16xf32>
    %53 = arith.addf %49, %52 : vector<16x16xf32>
    %c0_67 = arith.constant 0 : index
    %c0_68 = arith.constant 0 : index
    %c0_69 = arith.constant 0 : index
    %54 = vector.load %arg4[%c0_67, %c0_68, %c0_69] : memref<1x16x16xf32, #tpu.memory_space<vmem>>, vector<1x16x16xf32>
    %55 = vector.shape_cast %54 : vector<1x16x16xf32> to vector<16x16xf32>
    %cst_70 = arith.constant 0.000000e+00 : f32
    %56 = vector.broadcast %cst_70 : f32 to vector<1x1x1xf32>
    %57 = arith.mulf %42, %42 : vector<16x16xf32>
    %58 = arith.mulf %53, %53 : vector<16x16xf32>
    %59 = arith.addf %57, %58 : vector<16x16xf32>
    %60 = arith.mulf %55, %59 : vector<16x16xf32>
    %61 = vector.shape_cast %60 : vector<16x16xf32> to vector<1x16x16xf32>
    %cst_71 = arith.constant dense<0.000000e+00> : vector<1xf32>
    %62 = vector.multi_reduction <add>, %61, %cst_71 [1, 2] : vector<1x16x16xf32> to vector<1xf32>
    %63 = vector.shape_cast %62 : vector<1xf32> to vector<1x1x1xf32>
    %64 = vector.extract %63[0, 0, 0] : f32 from vector<1x1x1xf32>
    %65 = vector.broadcast %64 : f32 to vector<1x1x1xf32>
    %66 = arith.addf %56, %65 : vector<1x1x1xf32>
    %c0_72 = arith.constant 0 : index
    %c0_73 = arith.constant 0 : index
    %c0_74 = arith.constant 0 : index
    %67 = vector.load %arg5[%c0_72, %c0_73, %c0_74] : memref<1x1x1xf32, #tpu.memory_space<vmem>>, vector<1x1x1xf32>
    tpu.vector_store %arg5[%c0_72, %c0_73, %c0_74], %66 {strides = array<i32>} : memref<1x1x1xf32, #tpu.memory_space<vmem>>, vector<1x1x1xf32>,
    %cst_75 = arith.constant 0.000000e+00 : f32
    %68 = vector.broadcast %cst_75 : f32 to vector<1x1x1xf32>
    %69 = vector.shape_cast %55 : vector<16x16xf32> to vector<1x16x16xf32>
    %cst_76 = arith.constant dense<0.000000e+00> : vector<1xf32>
    %70 = vector.multi_reduction <add>, %69, %cst_76 [1, 2] : vector<1x16x16xf32> to vector<1xf32>
    %71 = vector.shape_cast %70 : vector<1xf32> to vector<1x1x1xf32>
    %72 = vector.extract %71[0, 0, 0] : f32 from vector<1x1x1xf32>
    %73 = vector.broadcast %72 : f32 to vector<1x1x1xf32>
    %74 = arith.addf %68, %73 : vector<1x1x1xf32>
    %c0_77 = arith.constant 0 : index
    %c0_78 = arith.constant 0 : index
    %c0_79 = arith.constant 0 : index
    %75 = vector.load %arg6[%c0_77, %c0_78, %c0_79] : memref<1x1x1xf32, #tpu.memory_space<vmem>>, vector<1x1x1xf32>
    tpu.vector_store %arg6[%c0_77, %c0_78, %c0_79], %74 {strides = array<i32>} : memref<1x1x1xf32, #tpu.memory_space<vmem>>, vector<1x1x1xf32>,
    return
  }
  func.func @transform_0(%arg0: i32) -> (i32, i32, i32) {
    %c0_i32 = arith.constant 0 : i32
    %c0_i32_0 = arith.constant 0 : i32
    %c0_i32_1 = arith.constant 0 : i32
    %c0_i32_2 = arith.constant 0 : i32
    return %c0_i32, %c0_i32_0, %c0_i32_1 : i32, i32, i32
  }
  func.func @transform_1(%arg0: i32) -> (i32, i32, i32, i32) {
    %c0_i32 = arith.constant 0 : i32
    %c0_i32_0 = arith.constant 0 : i32
    %c0_i32_1 = arith.constant 0 : i32
    %c0_i32_2 = arith.constant 0 : i32
    return %arg0, %c0_i32, %c0_i32_0, %c0_i32_1 : i32, i32, i32, i32
  }
  func.func @transform_2(%arg0: i32) -> (i32, i32, i32, i32) {
    %c0_i32 = arith.constant 0 : i32
    %c0_i32_0 = arith.constant 0 : i32
    %c0_i32_1 = arith.constant 0 : i32
    %c0_i32_2 = arith.constant 0 : i32
    return %arg0, %c0_i32, %c0_i32_0, %c0_i32_1 : i32, i32, i32, i32
  }
  func.func @transform_3(%arg0: i32) -> (i32, i32, i32) {
    %c0_i32 = arith.constant 0 : i32
    %c0_i32_0 = arith.constant 0 : i32
    %c0_i32_1 = arith.constant 0 : i32
    return %arg0, %c0_i32, %c0_i32_0 : i32, i32, i32
  }
  func.func @transform_4(%arg0: i32) -> (i32, i32, i32) {
    %c0_i32 = arith.constant 0 : i32
    %c0_i32_0 = arith.constant 0 : i32
    %c0_i32_1 = arith.constant 0 : i32
    return %arg0, %c0_i32, %c0_i32_0 : i32, i32, i32
  }
  func.func @transform_5(%arg0: i32) -> (i32, i32, i32) {
    %c0_i32 = arith.constant 0 : i32
    %c0_i32_0 = arith.constant 0 : i32
    %c0_i32_1 = arith.constant 0 : i32
    return %arg0, %c0_i32, %c0_i32_0 : i32, i32, i32
  }
}

</mosaic_0001>

<bundles_post_ra>
// kernel: tpu_custom_call.1
= control target key start
LH: loop header
LB: loop body
LE: loop exit
PB: predicated region body
PF: predicated region fallthrough
CT: control target
= control target key end

     0   :  { %s4465_s0 = inlined_call_operand.hbm [shape: f32[5,16,16], index: 0, kind: input, shape index: {}]   ;;  %s4466_s1 = inlined_call_operand.hbm [shape: f32[2,2,16,16], index: 1, kind: input, shape index: {}]   ;;  %s4467_s2 = inlined_call_operand.hbm [shape: f32[2,2,16,16], index: 2, kind: input, shape index: {}]   ;;  %s4468_s3 = inlined_call_operand.hbm [shape: f32[2,16,16], index: 3, kind: input, shape index: {}]   ;;  %s4469_s4 = inlined_call_operand.vmem [shape: f32[2,1,1], index: 4, kind: output, shape index: {0}]   ;;  %s4470_s5 = inlined_call_operand.vmem [shape: f32[2,1,1], index: 5, kind: output, shape index: {1}]  }
   0x1   :  { %4478 = sst [smem:[#allocation14_spill]] %s4466_s1 }
   0x2   :  { %4479 = sst [smem:[#allocation15_spill]] %s4467_s2 }
   0x3   :  { %11 = vsyncpa [#allocation5], 0 }
   0x4   :  { %12 = vsyncpa [#allocation7], 0 }
   0x5   :  { %14 = vsyncpa [#allocation7 + $0x1], 0 }
   0x6   :  { %15 = vsyncpa [#allocation10], 0 }
   0x7   :  { %17 = vsyncpa [#allocation10 + $0x1], 0  ;;  %s3921_s18 = smov 0   ;;  %s3923_s19 = smov 0  }
   0x8   :  { %s3925_s20 = smov 0   ;;  %s3927_s21 = smov 0  }
   0x9 LB: > { %s3942_s22 = sadd.s32 1, %s3882_s21   ;;  %s51_s23 = sadd.s32 1, %s3878_s20  ;;  %s3882_s21 = sphi %s3927_s21, %s4499_s21   ;;  %s3878_s20 = sphi %s3925_s20, %s4498_s20   ;;  %s3874_s19 = sphi %s3923_s19, %s4497_s19   ;;  %s3870_s18 = sphi %s3921_s18, %s4496_s18  }
   0xa   : > { %s48_s24 = ssub.s32 %s3882_s21, %s3942_s22  ;;  %p58_p0 = scmp.ne.s32.totalorder %s3878_s20, %s3874_s19 }
   0xb   : > { %p49_p1 = scmp.eq.s32.totalorder %s48_s24, 0  ;;  %p59_p2 = scmp.eq.s32.totalorder %s3882_s21, 0 }
   0xc   : > { %p3684_p4 = scmp.lt.s32.totalorder %s3882_s21, 2  ;;  %s205_s26 = sand.u32 1, %s3882_s21  }
   0xd   : > { %s3951_s25 = scalar_select %p49_p1, %s3878_s20, %s51_s23  }
   0xe   : > { %p60_p3 = por %p59_p2, %p58_p0  ;;  %s3956_s27 = sand.u32 1, %s3878_s20  }
   0xf   : > { %s3130_s28 = sshll.u32 %s3956_s27, 5  ;;  %s3146_s29 = sshll.u32 %s3882_s21, 9 }
  0x10   : > { %s4480_s1 = sld [smem:[#allocation14_spill]]  ;;  %s209_s8 = scalar_lea.vmem [#allocation6], %s3130_s28 }
  0x11   : > { %s216_s9 = sshll.u32 %s209_s8, 4  ;;  %p3967_p5 = pnand %p3684_p4, %p60_p3  ;;  %s3971_s9 = int_to_ptr.vmem [resolvable:$true] %s216_s9 }
  0x12   : > { %s4482_s2 = sld [smem:[#allocation15_spill]]  ;;  %s3978_s14 = scalar_lea.sflag [#allocation7], %s205_s26 }
  0x13   : > { %s4481_s10 = scalar_select %p3967_p5, 1, 0 }
  0x14   : > { %p3984_p7 = pneg %p3967_p5 }
  0x16   : > { %s3963_s7 = scalar_lea.hbm %s4480_s1, %s3146_s29  ;;  %s3727_s24 = scalar_lea.hbm %s4480_s1, 1024 }
  0x17   : > { %s3722_s15 = scalar_lea.hbm %s3963_s7, 512  ;;  %p3728_p10 = scmp.lt.u32.totalorder %s3963_s7, %s4480_s1 }
  0x18   : > { %s3976_s13 = scalar_lea.hbm %s4482_s2, %s3146_s29  ;;  %p3723_p6 = scmp.ne.s32.totalorder %s3963_s7, %s3722_s15 }
  0x19   : > { %s4483_s16 = scalar_select %p3984_p7, 1, 0 }
  0x1a   : > { %p3725_p8 = pnand %p3984_p7, %p3723_p6  ;;  %p3729_p11 = scmp.lt.u32.totalorder %s3727_s24, %s3722_s15 }
  0x1b   : > { %p3731_p13 = scmp.lt.u32.totalorder %s3722_s15, %s3963_s7 }
  0x1c   : > { %p3726_p9 = pneg %p3725_p8  ;;  %p3730_p12 = por %p3729_p11, %p3728_p10 }
  0x1e   : > { %p3732_p0 = por %p3731_p13, %p3730_p12 }
  0x20   : > { %p3733_p1 = pnand %p3732_p0, %p3726_p9 }
  0x22   : > { %3736 = shalt.err (!%p3733_p1)
}
  0x23   : > { %s3737_s26 = scalar_lea.vmem %s3971_s9, 512  ;;  %s3884_s6 = smov [#allocation6]  }
  0x24   : > { %p3738_p2 = scmp.ne.s32.totalorder %s3971_s9, %s3737_s26  ;;  %s3742_s8 = sshll.u32 %s3884_s6, 4  ;;  %s3743_s8 = int_to_ptr.vmem [resolvable:$false] %s3742_s8 }
  0x25   : > { %s3744_s11 = scalar_lea.vmem %s3743_s8, 1024  ;;  %p3745_p6 = scmp.lt.s32.totalorder %s3971_s9, %s3743_s8 }
  0x26   : > { %p3740_p3 = pnand %p3738_p2, %p3984_p7  ;;  %p3746_p8 = scmp.lt.s32.totalorder %s3744_s11, %s3737_s26 }
  0x28   : > { %p3741_p4 = pneg %p3740_p3  ;;  %p3747_p10 = por %p3746_p8, %p3745_p6 }
  0x2a   : > { %p3748_p11 = pnand %p3747_p10, %p3741_p4 }
  0x2c   : > { %3751 = shalt.err (!%p3748_p11)
}
  0x2d   : > { %s3885_s12 = smov 128   ;;  %s3886_s15 = smov 8  }
  0x2e   : > { %3676 = dma.hbm_to_vmem [thread:$0]  (!%p3967_p5), %s3963_s7, 512, %s3971_s9, %s3978_s14, %s3885_s12, %s3885_s12, %s3886_s15  }
  0x2f   : > { %s230_s17 = scalar_lea.vmem [#allocation8], %s3130_s28  ;;  %s4016_s24 = sadd.s32 4294967295, %s3882_s21  }
  0x30   : > { %s237_s23 = sshll.u32 %s230_s17, 4  ;;  %p64_p9 = scmp.ne.s32.totalorder %s3874_s19, %s3870_s18  ;;  %s4013_s23 = int_to_ptr.vmem [resolvable:$true] %s237_s23 }
  0x31   : > { %p4471_p12 = scmp.eq.s32.totalorder %s4016_s24, 0  ;;  %p3127_p13 = scmp.ge.s32.totalorder %s3882_s21, 1 }
  0x32   : > { %p179_p0 = scmp.lt.s32.totalorder %s3882_s21, 3  ;;  %s3887_s9 = smov [#allocation4]  }
  0x33   : > { %p4025_p1 = por %p4471_p12, %p64_p9  ;;  %s191_s30 = sshll.u32 %s3887_s9, 4  ;;  %s4033_s30 = int_to_ptr.vmem [resolvable:$true] %s191_s30 }
  0x34   : > { %p4029_p2 = pnand %p3127_p13, %p179_p0  ;;  %s3136_s18 = sshll.u32 %s3956_s27, 4 }
  0x35   : > { %s4484_s7 = scalar_select %p4025_p1, 1, 0 }
  0x36   : > { %s4485_s28 = scalar_select %p4029_p2, 1, 0 }
  0x37   : > { %s3752_s29 = scalar_lea.hbm %s3976_s13, 512  ;;  %s3757_s8 = scalar_lea.hbm %s4482_s2, 1024 }
  0x38   : > { %p3753_p4 = scmp.ne.s32.totalorder %s3976_s13, %s3752_s29  ;;  %p3758_p10 = scmp.lt.u32.totalorder %s3976_s13, %s4482_s2 }
  0x39   : > { %p3759_p11 = scmp.lt.u32.totalorder %s3757_s8, %s3752_s29  ;;  %p3761_p13 = scmp.lt.u32.totalorder %s3752_s29, %s3976_s13 }
  0x3a   : > { %p3755_p6 = pnand %p3753_p4, %p3984_p7 }
  0x3b   : > { %p3760_p9 = por %p3759_p11, %p3758_p10 }
  0x3c   : > { %p3756_p8 = pneg %p3755_p6 }
  0x3d   : > { %p3762_p0 = por %p3761_p13, %p3760_p9 }
  0x3f   : > { %p3763_p12 = pnand %p3762_p0, %p3756_p8 }
  0x41   : > { %3766 = shalt.err (!%p3763_p12)
}
  0x42   : > { %s3767_s9 = scalar_lea.vmem %s4013_s23, 512  ;;  %s3888_s26 = smov [#allocation8]  }
  0x43   : > { %p3768_p4 = scmp.ne.s32.totalorder %s4013_s23, %s3767_s9  ;;  %s3772_s6 = sshll.u32 %s3888_s26, 4  ;;  %s3773_s6 = int_to_ptr.vmem [resolvable:$false] %s3772_s6 }
  0x44   : > { %s3774_s11 = scalar_lea.vmem %s3773_s6, 1024  ;;  %p3775_p1 = scmp.lt.s32.totalorder %s4013_s23, %s3773_s6 }
  0x45   : > { %p3770_p6 = pnand %p3768_p4, %p3984_p7  ;;  %p3776_p2 = scmp.lt.s32.totalorder %s3774_s11, %s3767_s9 }
  0x47   : > { %p3771_p3 = pneg %p3770_p6  ;;  %p3777_p10 = por %p3776_p2, %p3775_p1 }
  0x49   : > { %p3778_p11 = pnand %p3777_p10, %p3771_p3 }
  0x4b   : > { %3781 = shalt.err (!%p3778_p11)
}
  0x4c   : > { %3679 = dma.hbm_to_vmem [thread:$0]  (!%p3967_p5), %s3976_s13, 512, %s4013_s23, %s3978_s14, %s3885_s12, %s3885_s12, %s3886_s15  }
  0x4d   : > { %p4486_p12 = scmp.eq.s32.totalorder %s4016_s24, 0  ;;  %p4487_p8 = scmp.ne.s32.totalorder %s4485_s28, 0 }
  0x4e   : > { %s3148_s8 = sshll.u32 %s3882_s21, 8  ;;  %s251_s17 = scalar_lea.vmem [#allocation9], %s3136_s18 }
  0x4f   : > { %p4488_p9 = pneg %p4487_p8  ;;  %s258_s9 = sshll.u32 %s251_s17, 4  ;;  %s4104_s9 = int_to_ptr.vmem [resolvable:$true] %s258_s9 }
  0x50   : > { %s4078_s11 = scalar_lea.hbm %s4468_s3, %s3148_s8  ;;  %s3782_s13 = scalar_lea.hbm %s4465_s0, 1280 }
  0x51   : > { %p4068_p13 = pnand %p4488_p9, %p4486_p12  ;;  %p3783_p1 = scmp.ne.s32.totalorder %s4465_s0, %s3782_s13 }
  0x52   : > { %p3789_p4 = scmp.lt.u32.totalorder %s3782_s13, %s4465_s0 }
  0x53   : > { %p3784_p2 = pneg %p4068_p13 }
  0x55   : > { %p3785_p3 = pnand %p3784_p2, %p3783_p1 }
  0x57   : > { %p3786_p0 = pneg %p3785_p3 }
  0x59   : > { %p3791_p6 = pnand %p3789_p4, %p3786_p0 }
  0x5b   : > { %3794 = shalt.err (!%p3791_p6)
}
  0x5c   : > { %s3795_s8 = scalar_lea.vmem %s4033_s30, 1280  ;;  %p3803_p9 = scmp.lt.s32.totalorder %s4033_s30, %s4033_s30 }
  0x5d   : > { %p3796_p10 = scmp.ne.s32.totalorder %s4033_s30, %s3795_s8  ;;  %p3804_p8 = scmp.lt.s32.totalorder %s3795_s8, %s3795_s8 }
  0x5f   : > { %p3798_p11 = pnand %p3796_p10, %p3784_p2  ;;  %p3805_p5 = por %p3804_p8, %p3803_p9 }
  0x61   : > { %p3799_p12 = pneg %p3798_p11 }
  0x63   : > { %p3806_p7 = pnand %p3805_p5, %p3799_p12 }
  0x65   : > { %3809 = shalt.err (!%p3806_p7)
}
  0x66   : > { %3672 = dma.hbm_to_vmem [thread:$0]  (!%p4068_p13), %s4465_s0, 1280, %s4033_s30, [#allocation5], %s3885_s12, %s3885_s12, %s3886_s15  }
  0x67   : > { %s248_s17 = scalar_lea.sflag [#allocation10], %s3956_s27  ;;  %s3810_s26 = scalar_lea.hbm %s4078_s11, 256 }
  0x68   : > { %p3811_p5 = scmp.ne.s32.totalorder %s4078_s11, %s3810_s26  ;;  %p4490_p7 = scmp.ne.s32.totalorder %s4483_s16, 0 }
  0x69   : > { %s3815_s13 = scalar_lea.hbm %s4468_s3, 512  ;;  %p3816_p2 = scmp.lt.u32.totalorder %s4078_s11, %s4468_s3 }
  0x6a   : > { %p3813_p8 = pnand %p3811_p5, %p4490_p7  ;;  %p3817_p3 = scmp.lt.u32.totalorder %s3815_s13, %s3810_s26 }
  0x6b   : > { %p3819_p4 = scmp.lt.u32.totalorder %s3810_s26, %s4078_s11 }
  0x6c   : > { %p3814_p1 = pneg %p3813_p8  ;;  %p3818_p0 = por %p3817_p3, %p3816_p2 }
  0x6e   : > { %p3820_p13 = por %p3819_p4, %p3818_p0 }
  0x70   : > { %p3821_p6 = pnand %p3820_p13, %p3814_p1 }
  0x72   : > { %3824 = shalt.err (!%p3821_p6)
}
  0x73   : > { %s3825_s30 = scalar_lea.vmem %s4104_s9, 256  ;;  %s3889_s21 = smov [#allocation9]  }
  0x74   : > { %p3826_p10 = scmp.ne.s32.totalorder %s4104_s9, %s3825_s30  ;;  %s3830_s18 = sshll.u32 %s3889_s21, 4  ;;  %s3831_s18 = int_to_ptr.vmem [resolvable:$false] %s3830_s18 }
  0x75   : > { %s3832_s8 = scalar_lea.vmem %s3831_s18, 512  ;;  %p3833_p9 = scmp.lt.s32.totalorder %s4104_s9, %s3831_s18 }
  0x76   : > { %p3828_p11 = pnand %p3826_p10, %p4490_p7  ;;  %p3834_p5 = scmp.lt.s32.totalorder %s3832_s8, %s3825_s30 }
  0x78   : > { %p3829_p12 = pneg %p3828_p11  ;;  %p3835_p8 = por %p3834_p5, %p3833_p9 }
  0x7a   : > { %p3836_p2 = pnand %p3835_p8, %p3829_p12 }
  0x7c   : > { %3839 = shalt.err (!%p3836_p2)
}
  0x7d   : > { %p4491_p1 = scmp.ne.s32.totalorder %s4481_s10, 0  ;;  %p4492_p7 = scmp.ne.s32.totalorder %s4485_s28, 0 }
  0x7e   : > { %p4493_p3 = scmp.eq.s32.totalorder (!%p4492_p7), %s4016_s24, 0 }
  0x7f   : > { %3682 = dma.hbm_to_vmem [thread:$0]  (!%p4491_p1), %s4078_s11, 256, %s4104_s9, %s248_s17, %s3885_s12, %s3885_s12, %s3886_s15  }
  0x80   : > { %270 = sbr.rel (%p4492_p7) target bundleno = 718 (0x2ce), region = 36 }
  0x87   : > { %3857 = dma.done.wait (%p4493_p3), [#allocation5], 1280   ;;  %p4494_p0 = pmov %p4493_p3 }
  0x88   : > { %s276_s10 = sand.u32 1, %s4016_s24   ;;  %s278_s16 = sand.u32 1, %s3874_s19  }
  0x89   : > { %3859 = vsyncadd (%p4494_p0), [#allocation5], 4294966016  ;;  %s3141_s1 = sshll.u32 %s278_s16, 5  ;;  %s277_s2 = scalar_lea.sflag [#allocation7], %s276_s10 }
  0x8a   : > { %s4141_s27 = scalar_lea.vmem [#allocation6], %s3141_s1  ;;  %p4495_p4 = scmp.ne.s32.totalorder %s4484_s7, 0 }
  0x8c   : > { %3861 = dma.done.wait (%p4495_p4), %s277_s2, 1024  }
  0x8d   : > { %3863 = vsyncadd (%p4495_p4), %s277_s2, 4294966272  ;;  %s3143_s12 = sshll.u32 %s278_s16, 4  ;;  %s289_s15 = scalar_lea.vmem [#allocation8], %s3141_s1 }
  0x8e   : > { %s295_s28 = scalar_lea.sflag [#allocation10], %s278_s16  ;;  %s4147_s9 = scalar_lea.vmem [#allocation9], %s3143_s12 }
  0x8f   : > { %3865 = dma.done.wait (%p4495_p4), %s295_s28, 256  }
  0x90   : > { %3867 = vsyncadd (%p4495_p4), %s295_s28, 4294967040  ;;  %vm342_vm0 = vcmask 123904   ;;  %v3890_v0 = vmov 0.0   ;;  %v1415_v1 = vld [vmem:[#allocation4 + $0x30] sm:$0xff]  ;;  %v1416_v2 = vld [vmem:[#allocation4 + $0x38] sm:$0xff]  ;;  %vm359_vm1 = vcmask 130048  }
  0x91   : > { %345 = vst.msk [vmem:[#allocation3] sm:$0x3] %vm342_vm0, %v3890_v0  ;;  %343 = vst.msk [vmem:[#allocation2] sm:$0x3] %vm342_vm0, %v3890_v0  ;;  %v393_v3 = vld [vmem:[#allocation4 + $0x10] sm:$0xff]  ;;  %v1424_v4 = vand.u32 4294901760, %v1415_v1 }
  0x92   : > { %344 = vst.msk [vmem:[#allocation2 + $0x12] sm:$0x3] %vm342_vm0, %v3890_v0  ;;  %346 = vst.msk [vmem:[#allocation3 + $0x12] sm:$0x3] %vm342_vm0, %v3890_v0  ;;  %v1427_v5 = vand.u32 4294901760, %v1416_v2  ;;  %v394_v6 = vld [vmem:[#allocation4 + $0x18] sm:$0xff] }
  0x93   : > { %v402_v7 = vand.u32 4294901760, %v393_v3  ;;  %v349_v8 = vld [vmem:[%s289_s15 + $0x10] sm:$0xff]  ;;  %v350_v9 = vld [vmem:[%s289_s15 + $0x18] sm:$0xff]  ;;  %v405_v10 = vand.u32 4294901760, %v394_v6  ;;  %v347_v13 = vld [vmem:[%s289_s15] sm:$0xff]  ;;  %v4157_v17 = vsub.f32 %v1415_v1, %v1424_v4  ;;  %p336_p13 = scmp.lt.s32.totalorder %s4016_s24, 1 }
  0x94   : > { %v353_v11 = vld [vmem:[%s4141_s27 + $0x10] sm:$0xff]  ;;  %v354_v12 = vld [vmem:[%s4141_s27 + $0x18] sm:$0xff]  ;;  %v4155_v14 = vpack.c.bf16 %v1427_v5, %v1424_v4  ;;  %v348_v18 = vld [vmem:[%s289_s15 + $0x8] sm:$0xff]  ;;  %v4163_v22 = vsub.f32 %v1416_v2, %v1427_v5  ;;  %vm2970_vm2 = vcmask 0  }
  0x95   : > { %v357_v15 = vsub.f32 %v349_v8, %v353_v11  ;;  %v358_v16 = vsub.f32 %v350_v9, %v354_v12  ;;  %v351_v19 = vld [vmem:[%s4141_s27] sm:$0xff]  ;;  %v352_v20 = vld [vmem:[%s4141_s27 + $0x8] sm:$0xff]  ;;  %v4161_v21 = vpack.c.bf16 %v405_v10, %v402_v7  ;;  %v1513_v25 = vand.u32 4294901760, %v4157_v17  ;;  %v4191_v36 = vld [vmem:[#allocation4 + $0x20] sm:$0xff]  ;;  %s4501_s24 = smov (!%p336_p13, %s4016_s24), 1 }
  0x96   : > { %v355_v23 = vsub.f32 %v347_v13, %v351_v19  ;;  %v356_v24 = vsub.f32 %v348_v18, %v352_v20  ;;  %3540 = vmatprep.subr.bf16.mxu1 %v4155_v14  ;;  %v4169_v26 = vsub.f32 %v393_v3, %v402_v7  ;;  %v4171_v27 = vsub.f32 %v394_v6, %v405_v10  ;;  %v1413_v40 = vld [vmem:[#allocation4 + $0x28] sm:$0xff]  ;;  %s338_s17 = scalar_lea.vmem %s4469_s4, %s4501_s24  ;;  %s341_s13 = scalar_lea.vmem %s4470_s5, %s4501_s24 }
  0x97   : > { %362 = vst.msk [vmem:[#allocation3 + $0x2] sm:$0xff] %vm359_vm1, %v357_v15  ;;  %363 = vst.msk [vmem:[#allocation3 + $0xa] sm:$0xff] %vm359_vm1, %v358_v16  ;;  %3542 = vmatpush3.bf16.msra.mxu1 %v4155_v14  ;;  %3480 = vmatprep.subr.bf16.mxu0 %v4161_v21  ;;  %v1520_v28 = vand.u32 4294901760, %v4163_v22  ;;  %v1932_v53 = vand.u32 4294901760, %v4191_v36  ;;  %v1935_v62 = vand.u32 4294901760, %v1413_v40 }
  0x98   : > { %360 = vst.msk [vmem:[#allocation2 + $0x2] sm:$0xff] %vm359_vm1, %v355_v23  ;;  %361 = vst.msk [vmem:[#allocation2 + $0xa] sm:$0xff] %vm359_vm1, %v356_v24  ;;  %3482 = vmatpush3.bf16.msra.mxu0 %v4161_v21  ;;  %v491_v29 = vand.u32 4294901760, %v4169_v26  ;;  %v498_v30 = vand.u32 4294901760, %v4171_v27 }
  0x99   : > { %v3543_v31 = vpack.c.bf16 %v1520_v28, %v1513_v25  ;;  %v4225_v12 = vsub.f32 %v4191_v36, %v1932_v53  ;;  %v4227_v13 = vsub.f32 %v1413_v40, %v1935_v62  ;;  %v4252_v36 = vpack.c.bf16 %v1935_v62, %v1932_v53 }
  0x9a   : > { %v492_v32 = vsub.f32 %v4169_v26, %v491_v29  ;;  %v499_v33 = vsub.f32 %v4171_v27, %v498_v30 }
  0x9b   : > { %3544 = vmatprep.subr.bf16.mxu1 %v3543_v31  ;;  %v2021_v24 = vand.u32 4294901760, %v4225_v12 }
  0x9c   : > { %v493_v34 = vand.u32 4294901760, %v492_v32  ;;  %v500_v35 = vand.u32 4294901760, %v499_v33  ;;  %v2028_v32 = vand.u32 4294901760, %v4227_v13 }
  0x9e   : > { %v382_v37 = vld [vmem:[#allocation3 + $0x1] sm:$0xff]  ;;  %v383_v39 = vld [vmem:[#allocation3 + $0x9] sm:$0xff]  ;;  %v3483_v45 = vpack.c.bf16 %v500_v35, %v493_v34 }
  0x9f   : > { %v384_v38 = vld [vmem:[#allocation3 + $0x3] sm:$0xff]  ;;  %v385_v42 = vld [vmem:[#allocation3 + $0xb] sm:$0xff]  ;;  %v373_v49 = vld [vmem:[#allocation2 + $0xb] sm:$0xff] }
  0xa0   : > { %v386_v41 = vadd.f32 %v384_v38, %v382_v37  ;;  %v370_v43 = vld [vmem:[#allocation2 + $0x1] sm:$0xff]  ;;  %v387_v46 = vadd.f32 %v385_v42, %v383_v39  ;;  %v371_v48 = vld [vmem:[#allocation2 + $0x9] sm:$0xff]  ;;  %v376_v50 = vld [vmem:[#allocation3] sm:$0xff]  ;;  %3484 = vmatprep.subr.bf16.mxu0 %v3483_v45  ;;  %v2022_v37 = vsub.f32 %v4225_v12, %v2021_v24  ;;  %v2029_v38 = vsub.f32 %v4227_v13, %v2028_v32 }
  0xa1   : > { %v372_v44 = vld [vmem:[#allocation2 + $0x3] sm:$0xff]  ;;  %v375_v52 = vsub.f32 %v371_v48, %v373_v49  ;;  %v4280_v49 = vpack.c.bf16 %v4163_v22, %v4157_v17 }
  0xa2   : > { %v374_v47 = vsub.f32 %v370_v43, %v372_v44  ;;  %v1418_v51 = vsel %vm359_vm1, %v386_v41, 0  ;;  %v378_v54 = vld [vmem:[#allocation3 + $0x4] sm:$0xff]  ;;  %v1421_v56 = vsel %vm359_vm1, %v387_v46, 0  ;;  %v379_v0 = vld [vmem:[#allocation3 + $0xc] sm:$0xff]  ;;  %v2023_v41 = vand.u32 4294901760, %v2022_v37 }
  0xa3   : > { %v4195_v55 = vand.u32 4294901760, %v1418_v51  ;;  %v380_v58 = vadd.f32 %v378_v54, %v376_v50  ;;  %v4199_v59 = vand.u32 4294901760, %v1421_v56  ;;  %v399_v61 = vsel %vm359_vm1, %v375_v52, 0  ;;  %v377_v63 = vld [vmem:[#allocation3 + $0x8] sm:$0xff]  ;;  %v390_v54 = vld [vmem:[#allocation4] sm:$0xff]  ;;  %v365_v62 = vld [vmem:[#allocation2 + $0x8] sm:$0xff] }
  0xa4   : > { %v396_v57 = vsel %vm359_vm1, %v374_v47, 0  ;;  %v4207_v2 = vand.u32 4294901760, %v399_v61  ;;  %v381_v9 = vadd.f32 %v379_v0, %v377_v63  ;;  %v2030_v42 = vand.u32 4294901760, %v2029_v38  ;;  %v366_v52 = vld [vmem:[#allocation2 + $0x4] sm:$0xff] }
  0xa5   : > { %v4201_v60 = vand.u32 4294901760, %v396_v57  ;;  %v4205_v1 = vsub.f32 %v1418_v51, %v4195_v55  ;;  %v1926_v3 = vsel %vm359_vm1, %v380_v58, 0  ;;  %v4211_v4 = vsub.f32 %v1421_v56, %v4199_v59  ;;  %v364_v51 = vld [vmem:[#allocation2] sm:$0xff]  ;;  %v391_v56 = vld [vmem:[#allocation4 + $0x8] sm:$0xff] }
  0xa6   : > { %v4218_v7 = vsub.f32 %v399_v61, %v4207_v2  ;;  %v4220_v8 = vand.u32 4294901760, %v1926_v3  ;;  %v1929_v20 = vsel %vm359_vm1, %v381_v9, 0  ;;  %v1514_v43 = vsub.f32 %v4157_v17, %v1513_v25 }
  0xa7   : > { %v4214_v5 = vsub.f32 %v396_v57, %v4201_v60  ;;  %v1492_v6 = vand.u32 4294901760, %v4205_v1  ;;  %v1502_v10 = vand.u32 4294901760, %v4211_v4  ;;  %v4248_v34 = vand.u32 4294901760, %v1929_v20 }
  0xa8   : > { %v480_v15 = vand.u32 4294901760, %v4218_v7  ;;  %v4240_v19 = vsub.f32 %v1926_v3, %v4220_v8  ;;  %v1521_v44 = vsub.f32 %v4163_v22, %v1520_v28  ;;  %v1515_v46 = vand.u32 4294901760, %v1514_v43 }
  0xa9   : > { %v470_v11 = vand.u32 4294901760, %v4214_v5  ;;  %3378 = vmatprep.mubr.f32.mxu1 %v1492_v6  ;;  %v4262_v39 = vsub.f32 %v1929_v20, %v4248_v34  ;;  %v3555_v50 = vpack.c.bf16 %v2030_v42, %v2023_v41  ;;  %v3495_v17 = vpack.c.bf16 %v498_v30, %v491_v29  ;;  %v2435_v41 = vld [vmem:[#allocation4 + $0x48] sm:$0xff] }
  0xaa   : > { %3379 = vmatmul.mubr.f32.vlgmr.msra.gmra.mrb[0].mxu1 %v1502_v10  ;;  %v481_v18 = vsub.f32 %v4218_v7, %v480_v15  ;;  %v2000_v35 = vand.u32 4294901760, %v4240_v19  ;;  %v1522_v47 = vand.u32 4294901760, %v1521_v44  ;;  %v368_v22 = vsub.f32 %v364_v51, %v366_v52  ;;  %v388_v42 = vld [vmem:[#allocation3 + $0x2] sm:$0xff] }
  0xab   : > { %v471_v16 = vsub.f32 %v4214_v5, %v470_v11  ;;  %3546 = vmatpush3.bf16.msra.mxu1 %v3543_v31  ;;  %3385 = vmatprep.mubr.f32.mxu1 %v4195_v55  ;;  %v3487_v31 = vpack.c.bf16 %v4171_v27, %v4169_v26  ;;  %v3559_v57 = vpack.c.bf16 %v4227_v13, %v4225_v12  ;;  %v910_v58 = vand.u32 4294901760, %v390_v54  ;;  %v367_v27 = vld [vmem:[#allocation2 + $0xc] sm:$0xff] }
  0xac   : > { %3548 = vmatprep.subr.bf16.mxu1 %v4155_v14  ;;  %v482_v33 = vand.u32 4294901760, %v481_v18  ;;  %v2001_v40 = vsub.f32 %v4240_v19, %v2000_v35  ;;  %v4283_v25 = vpack.c.bf16 %v1522_v47, %v1515_v46  ;;  %v913_v61 = vand.u32 4294901760, %v391_v56  ;;  %v389_v46 = vld [vmem:[#allocation3 + $0xa] sm:$0xff] }
  0xad   : > { %v472_v23 = vand.u32 4294901760, %v471_v16  ;;  %v904_v26 = vsel %vm359_vm1, %v368_v22, 0  ;;  %v369_v30 = vsub.f32 %v365_v62, %v367_v27  ;;  %v4303_v63 = vsub.f32 %v390_v54, %v910_v58 }
  0xae   : > { %v2002_v48 = vand.u32 4294901760, %v2001_v40  ;;  %v4301_v29 = vand.u32 4294901760, %v904_v26  ;;  %v4305_v0 = vsub.f32 %v391_v56, %v913_v61  ;;  %v4323_v16 = vpack.c.bf16 %v913_v61, %v910_v58  ;;  %v2434_v40 = vld [vmem:[#allocation4 + $0x40] sm:$0xff] }
  0xaf   : > { %3273 = vmatprep.mubr.f32.mxu0 %v472_v23  ;;  %v999_v9 = vand.u32 4294901760, %v4303_v63  ;;  %v2443_v12 = vand.u32 4294901760, %v2434_v40  ;;  %v2446_v13 = vand.u32 4294901760, %v2435_v41  ;;  %v1493_v27 = vsub.f32 %v4205_v1, %v1492_v6 }
  0xb0   : > { %3274 = vmatmul.mubr.f32.vlgmr.msra.gmra.mrb[0].mxu0 %v482_v33  ;;  %v4311_v3 = vsub.f32 %v904_v26, %v4301_v29  ;;  %v3567_v33 = vpack.c.bf16 %v2028_v32, %v2021_v24  ;;  %v2437_v24 = vsel %vm359_vm1, %v388_v42, 0  ;;  %v3511_v51 = vpack.c.bf16 %v4305_v0, %v4303_v63 }
  0xb1   : > { %3486 = vmatpush3.bf16.msra.mxu0 %v3483_v45  ;;  %3280 = vmatprep.mubr.f32.mxu0 %v4201_v60  ;;  %v2010_v45 = vand.u32 4294901760, %v4262_v39  ;;  %v1000_v18 = vsub.f32 %v4303_v63, %v999_v9  ;;  %v4355_v44 = vand.u32 4294901760, %v2437_v24  ;;  %v4378_v52 = vpack.c.bf16 %v2446_v13, %v2443_v12 }
  0xb2   : > { %3488 = vmatprep.subr.bf16.mxu0 %v3487_v31  ;;  %3386 = vmatmul.mubr.f32.vlgmr.msra.gmra.mrb[0].mxu1 %v4199_v59  ;;  %v1503_v63 = vsub.f32 %v4211_v4, %v1502_v10 }
  0xb3   : > { %3550 = vmatpush3.bf16.msra.mxu1 %v4155_v14  ;;  %3392 = vmatprep.mubr.f32.mxu1 %v4195_v55  ;;  %v2011_v28 = vsub.f32 %v4262_v39, %v2010_v45  ;;  %v1001_v37 = vand.u32 4294901760, %v1000_v18  ;;  %v4366_v47 = vsub.f32 %v2437_v24, %v4355_v44 }
  0xb4   : > { %3552 = vmatprep.subr.bf16.mxu1 %v4252_v36 }
  0xb5   : > { %v2012_v53 = vand.u32 4294901760, %v2011_v28 }
  0xb8   : > { %3281 = vmatmul.mubr.f32.vlgmr.msra.gmra.mrb[0].mxu0 %v4207_v2 }
  0xb9   : > { %3490 = vmatpush3.bf16.msra.mxu0 %v3487_v31  ;;  %3287 = vmatprep.mubr.f32.mxu0 %v4214_v5  ;;  %v907_v5 = vsel %vm359_vm1, %v369_v30, 0 }
  0xba   : > { %3492 = vmatprep.subr.bf16.mxu0 %v4161_v21  ;;  %3393 = vmatmul.mubr.f32.vlgmr.msra.gmra.mrb[0].mxu1 %v4199_v59 }
  0xbb   : > { %3554 = vmatpush3.bf16.msra.mxu1 %v4252_v36  ;;  %3399 = vmatprep.mubr.f32.mxu1 %v2002_v48  ;;  %v2440_v48 = vsel %vm359_vm1, %v389_v46, 0 }
  0xbc   : > { %3556 = vmatprep.subr.bf16.mxu1 %v3555_v50 }
  0xc0   : > { %3288 = vmatmul.mubr.f32.vlgmr.msra.gmra.mrb[0].mxu0 %v4218_v7  ;;  %v4319_v7 = vand.u32 4294901760, %v907_v5 }
  0xc1   : > { %3494 = vmatpush3.bf16.msra.mxu0 %v4161_v21  ;;  %3294 = vmatprep.mubr.f32.mxu0 %v470_v11  ;;  %v1006_v11 = vand.u32 4294901760, %v4305_v0 }
  0xc2   : > { %3496 = vmatprep.subr.bf16.mxu0 %v3495_v17  ;;  %3400 = vmatmul.mubr.f32.vlgmr.msra.gmra.mrb[0].mxu1 %v2012_v53  ;;  %v4333_v23 = vsub.f32 %v907_v5, %v4319_v7 }
  0xc3   : > { %3558 = vmatpush3.bf16.msra.mxu1 %v3555_v50  ;;  %3406 = vmatprep.mubr.f32.mxu1 %v4220_v8  ;;  %v1007_v20 = vsub.f32 %v4305_v0, %v1006_v11  ;;  %v1494_v0 = vand.u32 4294901760, %v1493_v27 }
  0xc4   : > { %3560 = vmatprep.subr.bf16.mxu1 %v3559_v57 }
  0xc5   : > { %v1008_v38 = vand.u32 4294901760, %v1007_v20 }
  0xc7   : > { %v3507_v32 = vpack.c.bf16 %v1008_v38, %v1001_v37 }
  0xc8   : > { %3295 = vmatmul.mubr.f32.vlgmr.msra.gmra.mrb[0].mxu0 %v480_v15  ;;  %v978_v15 = vand.u32 4294901760, %v4311_v3 }
  0xc9   : > { %3498 = vmatpush3.bf16.msra.mxu0 %v3495_v17  ;;  %3301 = vmatprep.mubr.f32.mxu0 %v4201_v60 }
  0xca   : > { %3500 = vmatprep.subr.bf16.mxu0 %v4161_v21  ;;  %3407 = vmatmul.mubr.f32.vlgmr.msra.gmra.mrb[0].mxu1 %v4248_v34  ;;  %v979_v31 = vsub.f32 %v4311_v3, %v978_v15 }
  0xcb   : > { %3562 = vmatpush3.bf16.msra.mxu1 %v3559_v57  ;;  %3413 = vmatprep.mubr.f32.mxu1 %v4240_v19  ;;  %v4358_v19 = vsub.f32 %v2434_v40, %v2443_v12 }
  0xcc   : > { %3564 = vmatprep.subr.bf16.mxu1 %v4252_v36 }
  0xcd   : > { %v2532_v50 = vand.u32 4294901760, %v4358_v19 }
  0xcf   : > { %v2533_v17 = vsub.f32 %v4358_v19, %v2532_v50 }
  0xd0   : > { %3302 = vmatmul.mubr.f32.vlgmr.msra.gmra.mrb[0].mxu0 %v4207_v2 }
  0xd1   : > { %3502 = vmatpush3.bf16.msra.mxu0 %v4161_v21  ;;  %3308 = vmatprep.mubr.f32.mxu0 %v4201_v60  ;;  %v988_v21 = vand.u32 4294901760, %v4333_v23  ;;  %v980_v60 = vand.u32 4294901760, %v979_v31  ;;  %v2534_v56 = vand.u32 4294901760, %v2533_v17 }
  0xd2   : > { %3504 = vmatprep.subr.bf16.mxu0 %v4323_v16  ;;  %3414 = vmatmul.mubr.f32.vlgmr.msra.gmra.mrb[0].mxu1 %v4262_v39  ;;  %v4374_v39 = vand.u32 4294901760, %v2440_v48 }
  0xd3   : > { %3566 = vmatpush3.bf16.msra.mxu1 %v4252_v36  ;;  %3420 = vmatprep.mubr.f32.mxu1 %v2000_v35  ;;  %v989_v43 = vsub.f32 %v4333_v23, %v988_v21  ;;  %v4360_v35 = vsub.f32 %v2435_v41, %v2446_v13 }
  0xd4   : > { %3568 = vmatprep.subr.bf16.mxu1 %v3567_v33  ;;  %v2520_v53 = vsub.f32 %v2440_v48, %v4374_v39 }
  0xd5   : > { %v2539_v28 = vand.u32 4294901760, %v4360_v35 }
  0xd6   : > { %v2521_v58 = vand.u32 4294901760, %v2520_v53 }
  0xd7   : > { %v2540_v22 = vsub.f32 %v4360_v35, %v2539_v28  ;;  %v3591_v30 = vpack.c.bf16 %v2539_v28, %v2532_v50 }
  0xd8   : > { %3309 = vmatmul.mubr.f32.vlgmr.msra.gmra.mrb[0].mxu0 %v4207_v2  ;;  %v990_v2 = vand.u32 4294901760, %v989_v43 }
  0xd9   : > { %3506 = vmatpush3.bf16.msra.mxu0 %v4323_v16  ;;  %3315 = vmatprep.mubr.f32.mxu0 %v980_v60  ;;  %v2541_v57 = vand.u32 4294901760, %v2540_v22 }
  0xda   : > { %3508 = vmatprep.subr.bf16.mxu0 %v3507_v32  ;;  %3421 = vmatmul.mubr.f32.vlgmr.msra.gmra.mrb[0].mxu1 %v2010_v45  ;;  %v2511_v45 = vand.u32 4294901760, %v4366_v47 }
  0xdb   : > { %3570 = vmatpush3.bf16.msra.mxu1 %v3567_v33  ;;  %3427 = vmatprep.mubr.f32.mxu1 %v4220_v8  ;;  %v3579_v26 = vpack.c.bf16 %v2541_v57, %v2534_v56 }
  0xdc   : > { %3572 = vmatprep.subr.bf16.mxu1 %v4252_v36  ;;  %v2512_v54 = vsub.f32 %v4366_v47, %v2511_v45 }
  0xde   : > { %v2513_v61 = vand.u32 4294901760, %v2512_v54 }
  0xe0   : > { %3316 = vmatmul.mubr.f32.vlgmr.msra.gmra.mrb[0].mxu0 %v990_v2 }
  0xe1   : > { %3510 = vmatpush3.bf16.msra.mxu0 %v3507_v32  ;;  %3322 = vmatprep.mubr.f32.mxu0 %v4301_v29 }
  0xe2   : > { %3512 = vmatprep.subr.bf16.mxu0 %v3511_v51  ;;  %3428 = vmatmul.mubr.f32.vlgmr.msra.gmra.mrb[0].mxu1 %v4248_v34 }
  0xe3   : > { %3574 = vmatpush3.bf16.msra.mxu1 %v4252_v36  ;;  %3434 = vmatprep.mubr.f32.mxu1 %v4220_v8  ;;  %v2522_v36 = vsub.f32 %v2520_v53, %v2521_v58  ;;  %v3519_v8 = vpack.c.bf16 %v1006_v11, %v999_v9 }
  0xe4   : > { %3576 = vmatprep.subr.bf16.mxu1 %v4378_v52 }
  0xe5   : > { %v2523_v62 = vand.u32 4294901760, %v2522_v36 }
  0xe8   : > { %3323 = vmatmul.mubr.f32.vlgmr.msra.gmra.mrb[0].mxu0 %v4319_v7 }
  0xe9   : > { %3514 = vmatpush3.bf16.msra.mxu0 %v3511_v51  ;;  %3329 = vmatprep.mubr.f32.mxu0 %v4311_v3  ;;  %v1504_v3 = vand.u32 4294901760, %v1503_v63 }
  0xea   : > { %3516 = vmatprep.subr.bf16.mxu0 %v4323_v16  ;;  %3435 = vmatmul.mubr.f32.vlgmr.msra.gmra.mrb[0].mxu1 %v4248_v34  ;;  %v3583_v34 = vpack.c.bf16 %v4360_v35, %v4358_v19 }
  0xeb   : > { %3578 = vmatpush3.bf16.msra.mxu1 %v4378_v52  ;;  %3441 = vmatprep.mubr.f32.mxu1 %v2513_v61 }
  0xec   : > { %3580 = vmatprep.subr.bf16.mxu1 %v3579_v26 }
  0xf0   : > { %3330 = vmatmul.mubr.f32.vlgmr.msra.gmra.mrb[0].mxu0 %v4333_v23 }
  0xf1   : > { %3518 = vmatpush3.bf16.msra.mxu0 %v4323_v16  ;;  %3336 = vmatprep.mubr.f32.mxu0 %v978_v15 }
  0xf2   : > { %3520 = vmatprep.subr.bf16.mxu0 %v3519_v8  ;;  %3442 = vmatmul.mubr.f32.vlgmr.msra.gmra.mrb[0].mxu1 %v2523_v62 }
  0xf3   : > { %3582 = vmatpush3.bf16.msra.mxu1 %v3579_v26  ;;  %3448 = vmatprep.mubr.f32.mxu1 %v4355_v44 }
  0xf4   : > { %3584 = vmatprep.subr.bf16.mxu1 %v3583_v34 }
  0xf8   : > { %3337 = vmatmul.mubr.f32.vlgmr.msra.gmra.mrb[0].mxu0 %v988_v21 }
  0xf9   : > { %3522 = vmatpush3.bf16.msra.mxu0 %v3519_v8  ;;  %3343 = vmatprep.mubr.f32.mxu0 %v4301_v29 }
  0xfa   : > { %3524 = vmatprep.subr.bf16.mxu0 %v4323_v16  ;;  %3449 = vmatmul.mubr.f32.vlgmr.msra.gmra.mrb[0].mxu1 %v4374_v39 }
  0xfb   : > { %3586 = vmatpush3.bf16.msra.mxu1 %v3583_v34  ;;  %3455 = vmatprep.mubr.f32.mxu1 %v4366_v47 }
  0xfc   : > { %3588 = vmatprep.subr.bf16.mxu1 %v4378_v52 }
 0x100   : > { %3344 = vmatmul.mubr.f32.vlgmr.msra.gmra.mrb[0].mxu0 %v4319_v7 }
 0x101   : > { %3526 = vmatpush3.bf16.msra.mxu0 %v4323_v16  ;;  %3350 = vmatprep.mubr.f32.mxu0 %v4301_v29  ;;  %v2946_v16 = vld [vmem:[%s4147_s9] sm:$0xff] }
 0x102   : > { %3528 = vmatprep.subr.bf16.mxu0 %v4155_v14  ;;  %3456 = vmatmul.mubr.f32.vlgmr.msra.gmra.mrb[0].mxu1 %v2520_v53  ;;  %v2972_v31 = vsel %vm359_vm1, %v2946_v16, 0.0 }
 0x103   : > { %3590 = vmatpush3.bf16.msra.mxu1 %v4378_v52  ;;  %3462 = vmatprep.mubr.f32.mxu1 %v2511_v45 }
 0x104   : > { %3592 = vmatprep.subr.bf16.mxu1 %v3591_v30 }
 0x108   : > { %3351 = vmatmul.mubr.f32.vlgmr.msra.gmra.mrb[0].mxu0 %v4319_v7  ;;  %v2947_v7 = vld [vmem:[%s4147_s9 + $0x8] sm:$0xff] }
 0x109   : > { %3530 = vmatpush3.bf16.msra.mxu0 %v4155_v14  ;;  %3357 = vmatprep.mubr.f32.mxu0 %v1494_v0  ;;  %v2973_v37 = vsel %vm359_vm1, %v2947_v7, 0.0 }
 0x10a   : > { %3532 = vmatprep.subr.bf16.mxu0 %v4283_v25  ;;  %3463 = vmatmul.mubr.f32.vlgmr.msra.gmra.mrb[0].mxu1 %v2521_v58  ;;  %v2974_v40 = vadd.f32 %v2973_v37, %v2972_v31 }
 0x10b   : > { %3594 = vmatpush3.bf16.msra.mxu1 %v3591_v30  ;;  %3469 = vmatprep.mubr.f32.mxu1 %v4355_v44 }
 0x10c   : > { %3358 = vmatmul.mubr.f32.vlgmr.msra.gmra.mrb[2].mxu0 %v1504_v3  ;;  %3596 = vmatprep.subr.bf16.mxu1 %v4378_v52 }
 0x10d   : > { %3534 = vmatpush3.bf16.msra.mxu0 %v4283_v25  ;;  %3364 = vmatprep.mubr.f32.mxu0 %v4195_v55 }
 0x10e   : > { %3536 = vmatprep.subr.bf16.mxu0 %v4280_v49 }
 0x112   : > { %3470 = vmatmul.mubr.f32.vlgmr.msra.gmra.mrb[0].mxu1 %v4374_v39 }
 0x113   : > { %3598 = vmatpush3.bf16.msra.mxu1 %v4378_v52  ;;  %3476 = vmatprep.mubr.f32.mxu1 %v4355_v44 }
 0x114   : > { %3365 = vmatmul.mubr.f32.vlgmr.msra.gmra.mrb[2].mxu0 %v4199_v59 }
 0x115   : > { %3538 = vmatpush3.bf16.msra.mxu0 %v4280_v49  ;;  %3371 = vmatprep.mubr.f32.mxu0 %v4205_v1 }
 0x11a   : > { %3477 = vmatmul.mubr.f32.vlgmr.msra.gmra.mrb[0].mxu1 %v4374_v39 }
 0x11c   : > { %3372 = vmatmul.mubr.f32.vlgmr.msra.gmra.mrb[2].mxu0 %v4211_v4 }
 0x1db   : > { %v3352_v14 = vpop.f32.mrb[0].mxu0 }
 0x1dc   : > { %v1401_v55 = vpop.f32.mrb[1].mxu0  ;;  %v2949_v9 = vmul.f32 %v3352_v14, %v3352_v14 }
 0x1dd   : > { %v2948_v11 = vmul.f32 %v1401_v55, %v1401_v55 }
 0x1ed   : > { %v3478_v6 = vpop.f32.mrb[0].mxu1 }
 0x1ee   : > { %v2934_v25 = vpop.f32.mrb[1].mxu1 }
 0x1ef   : > { %v3373_v10 = vpop.f32.mrb[2].mxu0 }
 0x1f0   : > { %v3599_v59 = vadd.f32 %v3478_v6, %v3373_v10  ;;  %v1669_v29 = vpop.f32.mrb[3].mxu0 }
 0x1f1   : > { %v3600_v5 = vadd.f32 %v2934_v25, %v1669_v29 }
 0x1f2   : > { %v2951_v49 = vmul.f32 %v3599_v59, %v3599_v59 }
 0x1f3   : > { %v2950_v1 = vmul.f32 %v3600_v5, %v3600_v5 }
 0x1f4   : > { %v2953_v15 = vadd.f32 %v2951_v49, %v2949_v9 }
 0x1f5   : > { %v2952_v18 = vadd.f32 %v2950_v1, %v2948_v11 }
 0x1f6   : > { %v2955_v20 = vmul.f32 %v2953_v15, %v2947_v7 }
 0x1f7   : > { %v2954_v23 = vmul.f32 %v2952_v18, %v2946_v16 }
 0x1f8   : > { %v2957_v4 = vsel %vm359_vm1, %v2955_v20, 0.0 }
 0x1f9   : > { %v2956_v33 = vsel %vm359_vm1, %v2954_v23, 0.0 }
 0x1fa   : > { %v2958_v38 = vadd.f32 %v2957_v4, %v2956_v33 }
 0x1fc   : > { %2959 = vadd.xlane.f32.xlu0 %v2958_v38 }
 0x200   : > { %2975 = vadd.xlane.f32.xlu0 %v2974_v40 }
 0x289   : > { %v2960_v41 = vpop.xlane.xlu0 %2959 }
 0x28a   : > { %v2961_v42 = vrot.slane %v2960_v41, 4 }
 0x28c   : > { %v2962_v21 = vadd.f32 %v2961_v42, %v2960_v41 }
 0x28d   : > { %v2976_v60 = vpop.xlane.xlu0 %2975 }
 0x28e   : > { %v2963_v12 = vrot.slane %v2962_v21, 2  ;;  %v2977_v13 = vrot.slane %v2976_v60, 4 }
 0x290   : > { %v2978_v24 = vadd.f32 %v2977_v13, %v2976_v60  ;;  %v2964_v32 = vadd.f32 %v2963_v12, %v2962_v21 }
 0x292   : > { %v2979_v43 = vrot.slane %v2978_v24, 2  ;;  %v2965_v44 = vrot.slane %v2964_v32, 1 }
 0x294   : > { %v2980_v19 = vadd.f32 %v2979_v43, %v2978_v24  ;;  %v2966_v35 = vadd.f32 %v2965_v44, %v2964_v32 }
 0x296   : > { %3655 = vpush %v2966_v35  ;;  %v2981_v46 = vrot.slane %v2980_v19, 1 }
 0x298   : > { %v2982_v2 = vadd.f32 %v2981_v46, %v2980_v19 }
 0x29a   : > { %3657 = vpush %v2982_v2 }
 0x2c7   : > { %s3656_s26 = spop %3655 }
 0x2c8   : > { %v2968_v47 = vstv %s3656_s26 }
 0x2c9   : > { %2971 = vst.msk [vmem:[%s338_s17] sm:$0x1] %vm2970_vm2, %v2968_v47 }
 0x2cb   : > { %s3658_s14 = spop %3657 }
 0x2cc   : > { %v2984_v48 = vstv %s3658_s14 }
 0x2cd   : > { %2986 = vst.msk [vmem:[%s341_s13] sm:$0x1] %vm2970_vm2, %v2984_v48 }
 0x2ce PF: > { %p20_p6 = scmp.ge.s32.totalorder %s3942_s22, 4   ;;  %s4496_s18 = smov %s3874_s19 }
 0x2cf   : > { %s4497_s19 = smov %s3878_s20  ;;  %s4498_s20 = smov %s3951_s25 }
 0x2d0   : > { %s4499_s21 = smov %s3942_s22  ;;  %22 = sbr.rel (!%p20_p6) target bundleno = 9 (0x9), region = 121 }
 0x2d7   :  { %3016 = vsyncpa [#allocation5], 1 }
 0x2d8   :  { %3018 = vsyncpa [#allocation5 + $0x1], 1 }
 0x2d9   :  { %3019 = vsyncpa [#allocation7], 1 }
 0x2da   :  { %3021 = vsyncpa [#allocation7 + $0x1], 1 }
 0x2db   :  { %3022 = vsyncpa [#allocation10], 1 }
 0x2dc   :  { %3024 = vsyncpa [#allocation10 + $0x1], 1 }

</bundles_post_ra>
